<compile_context>
chip_gen: v6e
topology: v6e:2x2x1
jax: 0.10.0
libtpu: 0.0.40
codegen_flags: <defaults>
</compile_context>

<pallas_src>
import functools
import numpy as np

import jax
import jax.numpy as jnp
from jax.experimental import pallas as pl
from jax.experimental.pallas import tpu as pltpu


# ----------------------------------------------------------------------------
# Spatial operator construction (exact PyTorch semantics), plain numpy glue.
# ----------------------------------------------------------------------------
def _adaptive_pool_matrix(in_size, out_size):
    """P[i, j] such that AdaptiveAvgPool1d(out_size)(v) == P @ v."""
    P = np.zeros((out_size, in_size), dtype=np.float32)
    for i in range(out_size):
        start = (i * in_size) // out_size
        end = -((-(i + 1) * in_size) // out_size)  # ceil((i+1)*in/out)
        P[i, start:end] = 1.0 / (end - start)
    return P


def _bilinear_upsample_matrix(in_size, out_size):
    """U[i, j] s.t. F.interpolate(v, out_size, 'linear', align_corners=False) == U @ v."""
    U = np.zeros((out_size, in_size), dtype=np.float32)
    scale = in_size / out_size
    for i in range(out_size):
        src = (i + 0.5) * scale - 0.5
        src = max(src, 0.0)
        i0 = min(int(np.floor(src)), in_size - 1)
        i1 = min(i0 + 1, in_size - 1)
        w1 = src - i0
        U[i, i0] += 1.0 - w1
        U[i, i1] += w1
    return U


@functools.lru_cache(maxsize=32)
def _stacked_spatial_operators(H, W, pool_sizes):
    """Stacked, lane-dense operators (cached as device arrays, reused across calls).

    Returns:
      pT_all : (K, HW)  adaptive-avg-pool rows, all stages stacked (K = sum s*s)
      uT_all : (K, HW)  bilinear-upsample rows (transposed), all stages stacked
      mask   : (S, 1, K) 0/1 selector of each stage's column block
      K      : int
    """
    HW = H * W
    widths = tuple(int(s) * int(s) for s in pool_sizes)
    offsets = tuple(int(o) for o in np.cumsum((0,) + widths)[:-1])
    K = int(sum(widths))
    S = len(pool_sizes)

    pT = np.zeros((K, HW), np.float32)
    uT = np.zeros((K, HW), np.float32)
    mask = np.zeros((S, 1, K), np.float32)
    for i, s in enumerate(pool_sizes):
        P2 = np.kron(_adaptive_pool_matrix(H, s), _adaptive_pool_matrix(W, s))      # (s*s, HW)
        U2 = np.kron(_bilinear_upsample_matrix(s, H), _bilinear_upsample_matrix(s, W))  # (HW, s*s)
        lo, hi = offsets[i], offsets[i] + widths[i]
        pT[lo:hi, :] = P2
        uT[lo:hi, :] = U2.T
        mask[i, 0, lo:hi] = 1.0
    return jnp.asarray(pT), jnp.asarray(uT), jnp.asarray(mask), K


def _padded_bytes(shape, itemsize=4):
    """f32 VMEM tile footprint: last dim pads to 128, second-to-last to 8."""
    s = list(shape)
    s[-1] = -(-s[-1] // 128) * 128
    if len(s) >= 2:
        s[-2] = -(-s[-2] // 8) * 8
    return int(np.prod(s)) * itemsize


# ----------------------------------------------------------------------------
# Pallas kernel + wrapper
# ----------------------------------------------------------------------------
def psp_pooling_pallas(x, ws, bs, wb, bb, pool_sizes=(1, 2, 3, 6)):
    """x: (N, C_in, H, W) f32; ws: (S, C_out, C_in); bs: (S, C_out);
    wb: (C_out, C_in + S*C_out); bb: (C_out,).  Returns (N, C_out, H, W)."""
    pool_sizes = tuple(int(s) for s in pool_sizes)
    N, Cin, H, W = x.shape
    HW = H * W
    S = len(pool_sizes)
    Cout = ws.shape[1]

    pT_all, uT_all, mask, K = _stacked_spatial_operators(H, W, pool_sizes)

    # ---- host-side weight/bias folding (tiny, exact) ----
    hi = jax.lax.Precision.HIGHEST
    wbx = wb[:, :Cin]                                                   # (Cout, Cin): identity branch
    wbs = wb[:, Cin:].reshape(Cout, S, Cout).transpose(1, 0, 2)         # (S, Cout, Cout)
    weff = jnp.einsum('soc,sci->soi', wbs, ws, precision=hi)            # (S, Cout, Cin) folded stage conv
    b_total = (bb + jnp.einsum('soc,sc->o', wbs, bs, precision=hi)).reshape(Cout, 1)

    x_flat = x.reshape(N, Cin, HW)

    def kernel(x_ref, pT_ref, uT_ref, weff_ref, mask_ref, wbx_ref, bt_ref, o_ref):
        X = x_ref[0]                                                    # (Cin, HW)
        # Adaptive avg pooling of ALL stages in one matmul: contract both HW (lane) dims.
        pooled = jax.lax.dot_general(
            X, pT_ref[...], (((1,), (1,)), ((), ())),
            preferred_element_type=jnp.float32)                         # (Cin, K)
        # Folded per-stage 1x1 conv; the 0/1 column mask keeps each stage's block.
        conv_all = jnp.dot(weff_ref[0], pooled,
                           preferred_element_type=jnp.float32) * mask_ref[0]
        for s in range(1, S):                                           # static unroll, S = 4
            conv_all = conv_all + (jnp.dot(weff_ref[s], pooled,
                                           preferred_element_type=jnp.float32)
                                   * mask_ref[s])                       # (Cout, K)
        # Bottleneck identity branch + bilinear upsample of all stages (one wide matmul).
        acc = jnp.dot(wbx_ref[...], X, preferred_element_type=jnp.float32)       # (Cout, HW)
        acc = acc + jnp.dot(conv_all, uT_ref[...],
                            preferred_element_type=jnp.float32)                  # (Cout, HW)
        o_ref[0] = acc + bt_ref[...]

    # ---- cost estimate + VMEM budget ----
    flops = 2 * N * (Cin * HW * K            # stacked pooling
                     + S * Cout * Cin * K    # folded stage convs
                     + Cout * K * HW         # stacked upsample
                     + Cout * Cin * HW)      # identity branch of the bottleneck
    bytes_accessed = 4 * int(x_flat.size + pT_all.size + uT_all.size + mask.size
                             + weff.size + wbx.size + b_total.size + N * Cout * HW)
    cost = pl.CostEstimate(flops=flops, transcendentals=0, bytes_accessed=bytes_accessed)

    est = 2 * (_padded_bytes((Cin, HW)) + _padded_bytes((Cout, HW))
               + 2 * _padded_bytes((K, HW)) + S * _padded_bytes((Cout, Cin))
               + S * _padded_bytes((1, K)) + _padded_bytes((Cout, Cin))
               + _padded_bytes((Cout, 1)))
    est += 8 << 20                                    # headroom for temporaries / internal scratch
    try:
        phys = pltpu.get_tpu_info().vmem_capacity_bytes
    except Exception:
        phys = 128 << 20
    vmem_limit = int(min(phys * 3 // 4, max(32 << 20, est)))

    out = pl.pallas_call(
        kernel,
        out_shape=jax.ShapeDtypeStruct((N, Cout, HW), jnp.float32),
        grid=(N,),
        in_specs=[
            pl.BlockSpec((1, Cin, HW), lambda n: (n, 0, 0)),
            pl.BlockSpec((K, HW), lambda n: (0, 0)),        # pT_all (lane-dense, grid-invariant)
            pl.BlockSpec((K, HW), lambda n: (0, 0)),        # uT_all
            pl.BlockSpec((S, Cout, Cin), lambda n: (0, 0, 0)),
            pl.BlockSpec((S, 1, K), lambda n: (0, 0, 0)),
            pl.BlockSpec((Cout, Cin), lambda n: (0, 0)),
            pl.BlockSpec((Cout, 1), lambda n: (0, 0)),
        ],
        out_specs=pl.BlockSpec((1, Cout, HW), lambda n: (n, 0, 0)),
        compiler_params=pltpu.CompilerParams(
            dimension_semantics=("parallel",),
            vmem_limit_bytes=vmem_limit),
        cost_estimate=cost,
    )(x_flat, pT_all, uT_all, weff, mask, wbx, b_total)

    return out.reshape(N, Cout, H, W)


# ----------------------------------------------------------------------------
# Pure-JAX reference (unfused, full bottleneck weight + explicit concat, HIGHEST prec)
# ----------------------------------------------------------------------------
def psp_reference(x, ws, bs, wb, bb, pool_sizes=(1, 2, 3, 6)):
    N, Cin, H, W = x.shape
    HW = H * W
    Cout = ws.shape[1]
    hi = jax.lax.Precision.HIGHEST
    Xf = x.reshape(N, Cin, HW)
    feats = [Xf]
    for i, s in enumerate(pool_sizes):
        P = jnp.asarray(np.kron(_adaptive_pool_matrix(H, s), _adaptive_pool_matrix(W, s)))
        U = jnp.asarray(np.kron(_bilinear_upsample_matrix(s, H), _bilinear_upsample_matrix(s, W)))
        pooled = jnp.einsum('ncp,sp->ncs', Xf, P, precision=hi)
        conv = jnp.einsum('oc,ncs->nos', ws[i], pooled, precision=hi) + bs[i][None, :, None]
        up = jnp.einsum('ps,nos->nop', U, conv, precision=hi)
        feats.append(up)
    feat = jnp.concatenate(feats, axis=1)                          # (N, Cin + S*Cout, HW)
    out = jnp.einsum('oc,ncp->nop', wb, feat, precision=hi) + bb[None, :, None]
    return out.reshape(N, Cout, H, W)


if __name__ == "__main__":
    N, Cin, Cout, H, W = 2, 4, 8, 16, 16
    pool_sizes = (1, 2, 3, 6)
    S = len(pool_sizes)

    key = jax.random.PRNGKey(0)
    kx, kw, kb, kwb, kbb = jax.random.split(key, 5)
    x = jax.random.normal(kx, (N, Cin, H, W), dtype=jnp.float32)
    # Deterministic synthetic parameters (shapes from the module's __init__):
    ws = 0.1 * jax.random.normal(kw, (S, Cout, Cin), dtype=jnp.float32)          # stage 1x1 conv weights
    bs = 0.1 * jax.random.normal(kb, (S, Cout), dtype=jnp.float32)               # stage 1x1 conv biases
    wb = 0.1 * jax.random.normal(kwb, (Cout, Cin + S * Cout), dtype=jnp.float32)  # bottleneck weight
    bb = 0.1 * jax.random.normal(kbb, (Cout,), dtype=jnp.float32)                # bottleneck bias

    out = psp_pooling_pallas(x, ws, bs, wb, bb, pool_sizes)
    out = jax.block_until_ready(out)

    ref = psp_reference(x, ws, bs, wb, bb, pool_sizes)
    assert out.shape == (N, Cout, H, W)
    # Kernel matmuls run at default (native bf16 MXU) precision with f32 accumulation,
    # so compare against the HIGHEST-precision reference with loosened tolerances.
    err = float(jnp.max(jnp.abs(out - ref)))
    assert jnp.allclose(out, ref, atol=2e-2, rtol=2e-2), f"max abs err {err}"
    print("KERNEL_OK")
</pallas_src>

<mosaic_0001>
module attributes {stable_mosaic.version = 11 : i64} {
  func.func @kernel(%arg0: i32, %arg1: memref<1x4x256xf32, #tpu.memory_space<vmem>>, %arg2: memref<50x256xf32, #tpu.memory_space<vmem>>, %arg3: memref<50x256xf32, #tpu.memory_space<vmem>>, %arg4: memref<4x8x4xf32, #tpu.memory_space<vmem>>, %arg5: memref<4x1x50xf32, #tpu.memory_space<vmem>>, %arg6: memref<8x4xf32, #tpu.memory_space<vmem>>, %arg7: memref<8x1xf32, #tpu.memory_space<vmem>>, %arg8: memref<1x8x256xf32, #tpu.memory_space<vmem>>) attributes {dimension_semantics = [#tpu.dimension_semantics<parallel>], iteration_bounds = array<i64: 2>, scalar_prefetch = 0 : i64, scratch_operands = 0 : i64, tpu.core_type = #tpu.core_type<tc>, window_params = [{transform_indices = @transform_0, window_bounds = array<i64: 1, 4, 256>}, {pipeline_mode = #tpu.pipeline_mode<synchronous>, transform_indices = @transform_1, window_bounds = array<i64: 50, 256>}, {pipeline_mode = #tpu.pipeline_mode<synchronous>, transform_indices = @transform_2, window_bounds = array<i64: 50, 256>}, {pipeline_mode = #tpu.pipeline_mode<synchronous>, transform_indices = @transform_3, window_bounds = array<i64: 4, 8, 4>}, {pipeline_mode = #tpu.pipeline_mode<synchronous>, transform_indices = @transform_4, window_bounds = array<i64: 4, 1, 50>}, {pipeline_mode = #tpu.pipeline_mode<synchronous>, transform_indices = @transform_5, window_bounds = array<i64: 8, 4>}, {pipeline_mode = #tpu.pipeline_mode<synchronous>, transform_indices = @transform_6, window_bounds = array<i64: 8, 1>}, {transform_indices = @transform_7, window_bounds = array<i64: 1, 8, 256>}]} {
    %c0 = arith.constant 0 : index
    %c0_0 = arith.constant 0 : index
    %c0_1 = arith.constant 0 : index
    %0 = vector.load %arg1[%c0, %c0_0, %c0_1] : memref<1x4x256xf32, #tpu.memory_space<vmem>>, vector<1x4x256xf32>
    %1 = vector.shape_cast %0 : vector<1x4x256xf32> to vector<4x256xf32>
    %c0_2 = arith.constant 0 : index
    %c0_3 = arith.constant 0 : index
    %2 = vector.load %arg2[%c0_2, %c0_3] : memref<50x256xf32, #tpu.memory_space<vmem>>, vector<50x256xf32>
    %cst = arith.constant dense<0.000000e+00> : vector<4x50xf32>
    %3 = tpu.matmul %1, %2, %cst {dimension_numbers = #tpu.dot_dimension_numbers<[1], [1], [0], [0], [0, 0, 1, 0], [], []>} : vector<4x256xf32>, vector<50x256xf32>, vector<4x50xf32> -> vector<4x50xf32>
    %c0_4 = arith.constant 0 : index
    %c0_5 = arith.constant 0 : index
    %c0_6 = arith.constant 0 : index
    %4 = vector.load %arg4[%c0_4, %c0_5, %c0_6] : memref<4x8x4xf32, #tpu.memory_space<vmem>>, vector<1x8x4xf32>
    %5 = vector.shape_cast %4 : vector<1x8x4xf32> to vector<8x4xf32>
    %cst_7 = arith.constant dense<0.000000e+00> : vector<8x50xf32>
    %6 = tpu.matmul %5, %3, %cst_7 {dimension_numbers = #tpu.dot_dimension_numbers<[1], [0], [0], [1], [0, 0, 1, 1], [], []>} : vector<8x4xf32>, vector<4x50xf32>, vector<8x50xf32> -> vector<8x50xf32>
    %c0_8 = arith.constant 0 : index
    %c0_9 = arith.constant 0 : index
    %c0_10 = arith.constant 0 : index
    %7 = vector.load %arg5[%c0_8, %c0_9, %c0_10] : memref<4x1x50xf32, #tpu.memory_space<vmem>>, vector<1x1x50xf32>
    %8 = vector.shape_cast %7 : vector<1x1x50xf32> to vector<1x50xf32>
    %9 = vector.broadcast %8 : vector<1x50xf32> to vector<8x50xf32>
    %10 = arith.mulf %6, %9 : vector<8x50xf32>
    %c1 = arith.constant 1 : index
    %c0_11 = arith.constant 0 : index
    %c0_12 = arith.constant 0 : index
    %11 = vector.load %arg4[%c1, %c0_11, %c0_12] : memref<4x8x4xf32, #tpu.memory_space<vmem>>, vector<1x8x4xf32>
    %12 = vector.shape_cast %11 : vector<1x8x4xf32> to vector<8x4xf32>
    %cst_13 = arith.constant dense<0.000000e+00> : vector<8x50xf32>
    %13 = tpu.matmul %12, %3, %cst_13 {dimension_numbers = #tpu.dot_dimension_numbers<[1], [0], [0], [1], [0, 0, 1, 1], [], []>} : vector<8x4xf32>, vector<4x50xf32>, vector<8x50xf32> -> vector<8x50xf32>
    %c1_14 = arith.constant 1 : index
    %c0_15 = arith.constant 0 : index
    %c0_16 = arith.constant 0 : index
    %14 = vector.load %arg5[%c1_14, %c0_15, %c0_16] : memref<4x1x50xf32, #tpu.memory_space<vmem>>, vector<1x1x50xf32>
    %15 = vector.shape_cast %14 : vector<1x1x50xf32> to vector<1x50xf32>
    %16 = vector.broadcast %15 : vector<1x50xf32> to vector<8x50xf32>
    %17 = arith.mulf %13, %16 : vector<8x50xf32>
    %18 = arith.addf %10, %17 : vector<8x50xf32>
    %c2 = arith.constant 2 : index
    %c0_17 = arith.constant 0 : index
    %c0_18 = arith.constant 0 : index
    %19 = vector.load %arg4[%c2, %c0_17, %c0_18] : memref<4x8x4xf32, #tpu.memory_space<vmem>>, vector<1x8x4xf32>
    %20 = vector.shape_cast %19 : vector<1x8x4xf32> to vector<8x4xf32>
    %cst_19 = arith.constant dense<0.000000e+00> : vector<8x50xf32>
    %21 = tpu.matmul %20, %3, %cst_19 {dimension_numbers = #tpu.dot_dimension_numbers<[1], [0], [0], [1], [0, 0, 1, 1], [], []>} : vector<8x4xf32>, vector<4x50xf32>, vector<8x50xf32> -> vector<8x50xf32>
    %c2_20 = arith.constant 2 : index
    %c0_21 = arith.constant 0 : index
    %c0_22 = arith.constant 0 : index
    %22 = vector.load %arg5[%c2_20, %c0_21, %c0_22] : memref<4x1x50xf32, #tpu.memory_space<vmem>>, vector<1x1x50xf32>
    %23 = vector.shape_cast %22 : vector<1x1x50xf32> to vector<1x50xf32>
    %24 = vector.broadcast %23 : vector<1x50xf32> to vector<8x50xf32>
    %25 = arith.mulf %21, %24 : vector<8x50xf32>
    %26 = arith.addf %18, %25 : vector<8x50xf32>
    %c3 = arith.constant 3 : index
    %c0_23 = arith.constant 0 : index
    %c0_24 = arith.constant 0 : index
    %27 = vector.load %arg4[%c3, %c0_23, %c0_24] : memref<4x8x4xf32, #tpu.memory_space<vmem>>, vector<1x8x4xf32>
    %28 = vector.shape_cast %27 : vector<1x8x4xf32> to vector<8x4xf32>
    %cst_25 = arith.constant dense<0.000000e+00> : vector<8x50xf32>
    %29 = tpu.matmul %28, %3, %cst_25 {dimension_numbers = #tpu.dot_dimension_numbers<[1], [0], [0], [1], [0, 0, 1, 1], [], []>} : vector<8x4xf32>, vector<4x50xf32>, vector<8x50xf32> -> vector<8x50xf32>
    %c3_26 = arith.constant 3 : index
    %c0_27 = arith.constant 0 : index
    %c0_28 = arith.constant 0 : index
    %30 = vector.load %arg5[%c3_26, %c0_27, %c0_28] : memref<4x1x50xf32, #tpu.memory_space<vmem>>, vector<1x1x50xf32>
    %31 = vector.shape_cast %30 : vector<1x1x50xf32> to vector<1x50xf32>
    %32 = vector.broadcast %31 : vector<1x50xf32> to vector<8x50xf32>
    %33 = arith.mulf %29, %32 : vector<8x50xf32>
    %34 = arith.addf %26, %33 : vector<8x50xf32>
    %c0_29 = arith.constant 0 : index
    %c0_30 = arith.constant 0 : index
    %35 = vector.load %arg6[%c0_29, %c0_30] : memref<8x4xf32, #tpu.memory_space<vmem>>, vector<8x4xf32>
    %cst_31 = arith.constant dense<0.000000e+00> : vector<8x256xf32>
    %36 = tpu.matmul %35, %1, %cst_31 {dimension_numbers = #tpu.dot_dimension_numbers<[1], [0], [0], [1], [0, 0, 1, 1], [], []>} : vector<8x4xf32>, vector<4x256xf32>, vector<8x256xf32> -> vector<8x256xf32>
    %c0_32 = arith.constant 0 : index
    %c0_33 = arith.constant 0 : index
    %37 = vector.load %arg3[%c0_32, %c0_33] : memref<50x256xf32, #tpu.memory_space<vmem>>, vector<50x256xf32>
    %cst_34 = arith.constant dense<0.000000e+00> : vector<8x256xf32>
    %38 = tpu.matmul %34, %37, %cst_34 {dimension_numbers = #tpu.dot_dimension_numbers<[1], [0], [0], [1], [0, 0, 1, 1], [], []>} : vector<8x50xf32>, vector<50x256xf32>, vector<8x256xf32> -> vector<8x256xf32>
    %39 = arith.addf %36, %38 : vector<8x256xf32>
    %c0_35 = arith.constant 0 : index
    %c0_36 = arith.constant 0 : index
    %40 = vector.load %arg7[%c0_35, %c0_36] : memref<8x1xf32, #tpu.memory_space<vmem>>, vector<8x1xf32>
    %41 = vector.broadcast %40 : vector<8x1xf32> to vector<8x256xf32>
    %42 = arith.addf %39, %41 : vector<8x256xf32>
    %c0_37 = arith.constant 0 : index
    %c0_38 = arith.constant 0 : index
    %c0_39 = arith.constant 0 : index
    %43 = vector.load %arg8[%c0_37, %c0_38, %c0_39] : memref<1x8x256xf32, #tpu.memory_space<vmem>>, vector<1x8x256xf32>
    %44 = vector.shape_cast %43 : vector<1x8x256xf32> to vector<8x256xf32>
    %45 = vector.shape_cast %42 : vector<8x256xf32> to vector<1x8x256xf32>
    tpu.vector_store %arg8[%c0_37, %c0_38, %c0_39], %45 {strides = array<i32>} : memref<1x8x256xf32, #tpu.memory_space<vmem>>, vector<1x8x256xf32>,
    return
  }
  func.func @transform_0(%arg0: i32) -> (i32, i32, i32) {
    %c0_i32 = arith.constant 0 : i32
    %c0_i32_0 = arith.constant 0 : i32
    %c0_i32_1 = arith.constant 0 : i32
    return %arg0, %c0_i32, %c0_i32_0 : i32, i32, i32
  }
  func.func @transform_1(%arg0: i32) -> (i32, i32) {
    %c0_i32 = arith.constant 0 : i32
    %c0_i32_0 = arith.constant 0 : i32
    %c0_i32_1 = arith.constant 0 : i32
    return %c0_i32, %c0_i32_0 : i32, i32
  }
  func.func @transform_2(%arg0: i32) -> (i32, i32) {
    %c0_i32 = arith.constant 0 : i32
    %c0_i32_0 = arith.constant 0 : i32
    %c0_i32_1 = arith.constant 0 : i32
    return %c0_i32, %c0_i32_0 : i32, i32
  }
  func.func @transform_3(%arg0: i32) -> (i32, i32, i32) {
    %c0_i32 = arith.constant 0 : i32
    %c0_i32_0 = arith.constant 0 : i32
    %c0_i32_1 = arith.constant 0 : i32
    %c0_i32_2 = arith.constant 0 : i32
    return %c0_i32, %c0_i32_0, %c0_i32_1 : i32, i32, i32
  }
  func.func @transform_4(%arg0: i32) -> (i32, i32, i32) {
    %c0_i32 = arith.constant 0 : i32
    %c0_i32_0 = arith.constant 0 : i32
    %c0_i32_1 = arith.constant 0 : i32
    %c0_i32_2 = arith.constant 0 : i32
    return %c0_i32, %c0_i32_0, %c0_i32_1 : i32, i32, i32
  }
  func.func @transform_5(%arg0: i32) -> (i32, i32) {
    %c0_i32 = arith.constant 0 : i32
    %c0_i32_0 = arith.constant 0 : i32
    %c0_i32_1 = arith.constant 0 : i32
    return %c0_i32, %c0_i32_0 : i32, i32
  }
  func.func @transform_6(%arg0: i32) -> (i32, i32) {
    %c0_i32 = arith.constant 0 : i32
    %c0_i32_0 = arith.constant 0 : i32
    %c0_i32_1 = arith.constant 0 : i32
    return %c0_i32, %c0_i32_0 : i32, i32
  }
  func.func @transform_7(%arg0: i32) -> (i32, i32, i32) {
    %c0_i32 = arith.constant 0 : i32
    %c0_i32_0 = arith.constant 0 : i32
    %c0_i32_1 = arith.constant 0 : i32
    return %arg0, %c0_i32, %c0_i32_0 : i32, i32, i32
  }
}

</mosaic_0001>

<bundles_post_ra>
// kernel: tpu_custom_call.1
= control target key start
LH: loop header
LB: loop body
LE: loop exit
PB: predicated region body
PF: predicated region fallthrough
CT: control target
= control target key end

     0   :  { %12 = vsyncpa [#allocation3], 0  ;;  %s1498_s0 = inlined_call_operand.vmem [shape: f32[2,4,256], index: 0, kind: input, shape index: {}]   ;;  %s1499_s1 = inlined_call_operand.hbm [shape: f32[50,256], index: 1, kind: input, shape index: {}]   ;;  %s1500_s2 = inlined_call_operand.hbm [shape: f32[50,256], index: 2, kind: input, shape index: {}]   ;;  %s1501_s3 = inlined_call_operand.vmem [shape: f32[4,8,4], index: 3, kind: input, shape index: {}]   ;;  %s1502_s4 = inlined_call_operand.vmem [shape: f32[4,1,50], index: 4, kind: input, shape index: {}]   ;;  %s1503_s5 = inlined_call_operand.vmem [shape: f32[8,4], index: 5, kind: input, shape index: {}]   ;;  %s1504_s6 = inlined_call_operand.vmem [shape: f32[8,1], index: 6, kind: input, shape index: {}]   ;;  %s1505_s7 = inlined_call_operand.hbm [shape: f32[2,8,256], index: 7, kind: output, shape index: {}]  }
   0x1   :  { %13 = vsyncpa [#allocation6], 0 }
   0x2   :  { %14 = vsyncpa [#allocation4], 0 }
   0x3   :  { %16 = vsyncpa [#allocation4 + $0x1], 0  ;;  %s1325_s24 = smov 0   ;;  %s1327_s25 = smov 0  }
   0x4   :  { %s1329_s26 = smov 0   ;;  %s1331_s27 = smov 0  }
   0x5 LB: > { %s1346_s28 = sadd.s32 4294967295, %s1275_s27   ;;  %s1018_s29 = sadd.s32 4294967294, %s1275_s27   ;;  %s1275_s27 = sphi %s1331_s27, %s1519_s27   ;;  %s1271_s26 = sphi %s1329_s26, %s1518_s26   ;;  %s1267_s25 = sphi %s1327_s25, %s1517_s25   ;;  %s1263_s24 = sphi %s1325_s24, %s1516_s24  }
   0x6   : > { %s1350_s30 = sadd.s32 1, %s1275_s27   ;;  %s181_s8 = sadd.s32 1, %s1271_s26 }
   0x7   : > { %s178_s9 = ssub.s32 %s1275_s27, %s1350_s30  ;;  %p191_p0 = scmp.ne.s32.totalorder %s1271_s26, %s1267_s25 }
   0x8   : > { %p179_p1 = scmp.eq.s32.totalorder %s178_s9, 0  ;;  %p192_p2 = scmp.eq.s32.totalorder %s1346_s28, 1 }
   0x9   : > { %p197_p3 = scmp.ne.s32.totalorder %s1267_s25, %s1263_s24  ;;  %p198_p4 = scmp.eq.s32.totalorder %s1018_s29, 1 }
   0xa   : > { %s1361_s10 = scalar_select %p179_p1, %s1271_s26, %s181_s8  }
   0xb   : > { %p1363_p5 = por %p192_p2, %p191_p0  ;;  %p1367_p6 = por %p198_p4, %p197_p3 }
   0xc   : > { %p1019_p7 = scmp.ge.s32.totalorder %s1275_s27, 1  ;;  %p205_p8 = scmp.lt.s32.totalorder %s1275_s27, 3 }
   0xd   : > { %s1508_s12 = scalar_select %p1367_p6, 1, 0 }
   0xe   : > { %p1506_p9 = scmp.eq.s32.totalorder %s1346_s28, 0  ;;  %p1374_p10 = pnand %p1019_p7, %p205_p8 }
   0xf   : > { %s1277_s14 = smov [#allocation2]   ;;  %s1278_s17 = smov [#allocation5]  }
  0x10   : > { %s217_s15 = sshll.u32 %s1277_s14, 4  ;;  %p1098_p11 = pneg %p1374_p10  ;;  %s218_s15 = int_to_ptr.vmem [resolvable:$true] %s217_s15 }
  0x11   : > { %s230_s18 = sshll.u32 %s1278_s17, 4  ;;  %s1166_s19 = scalar_lea.vmem %s218_s15, 1792  ;;  %s231_s18 = int_to_ptr.vmem [resolvable:$true] %s230_s18 }
  0x12   : > { %p1382_p12 = pnand %p1506_p9, %p1098_p11  ;;  %p1167_p0 = scmp.ne.s32.totalorder %s218_s15, %s1166_s19 }
  0x13   : > { %p1174_p3 = scmp.lt.s32.totalorder %s218_s15, %s218_s15  ;;  %p1175_p4 = scmp.lt.s32.totalorder %s1166_s19, %s1166_s19 }
  0x14   : > { %p1157_p13 = pneg %p1382_p12 }
  0x15   : > { %p1176_p7 = por %p1175_p4, %p1174_p3 }
  0x16   : > { %p1169_p1 = pnand %p1167_p0, %p1157_p13 }
  0x18   : > { %p1170_p2 = pneg %p1169_p1 }
  0x1a   : > { %p1177_p8 = pnand %p1176_p7, %p1170_p2 }
  0x1c   : > { %1180 = shalt.err (!%p1177_p8)
}
  0x1d   : > { %s1279_s20 = smov 256   ;;  %s1280_s21 = smov 16  }
  0x1e   : > { %1101 = dma.hbm_to_vmem [thread:$0]  (!%p1382_p12), %s1499_s1, 1792, %s218_s15, [#allocation3], %s1279_s20, %s1279_s20, %s1280_s21  }
  0x1f   : > { %s1192_s29 = scalar_lea.vmem %s231_s18, 1792  ;;  %p1200_p9 = scmp.lt.s32.totalorder %s231_s18, %s231_s18 }
  0x20   : > { %p1193_p11 = scmp.ne.s32.totalorder %s231_s18, %s1192_s29  ;;  %p1201_p6 = scmp.lt.s32.totalorder %s1192_s29, %s1192_s29 }
  0x22   : > { %p1195_p0 = pnand %p1193_p11, %p1157_p13  ;;  %p1202_p3 = por %p1201_p6, %p1200_p9 }
  0x24   : > { %p1196_p1 = pneg %p1195_p0 }
  0x26   : > { %p1203_p2 = pnand %p1202_p3, %p1196_p1 }
  0x28   : > { %1206 = shalt.err (!%p1203_p2)
}
  0x29   : > { %1104 = dma.hbm_to_vmem [thread:$0]  (!%p1382_p12), %s1500_s2, 1792, %s231_s18, [#allocation6], %s1279_s20, %s1279_s20, %s1280_s21  }
  0x2a   : > { %266 = sbr.rel (%p1374_p10) target bundleno = 695 (0x2b7), region = 48  ;;  %p1511_p4 = scmp.eq.s32.totalorder (!%p1374_p10), %s1346_s28, 0 }
  0x2f   : > { %1250 = dma.done.wait (%p1511_p4), [#allocation3], 1792   ;;  %p1512_p13 = pmov %p1511_p4 }
  0x30   : > { %p1513_p7 = pmov %p1511_p4 }
  0x31   : > { %1252 = vsyncadd (%p1512_p13), [#allocation3], 4294965504 }
  0x32   : > { %1254 = dma.done.wait (%p1513_p7), [#allocation6], 1792   ;;  %p1514_p6 = pmov %p1511_p4 }
  0x33   : > { %p302_p9 = scmp.lt.s32.totalorder %s1346_s28, 1  ;;  %v321_v0 = vld [vmem:[#allocation2 + $0x68] sm:$0x3]  ;;  %v320_v1 = vld [vmem:[#allocation2 + $0x60] sm:$0x3]  ;;  %v319_v2 = vld [vmem:[#allocation2 + $0x58] sm:$0xff] }
  0x34   : > { %1256 = vsyncadd (%p1514_p6), [#allocation6], 4294965504  ;;  %343 = vmatprep.subr.mxu0 %v321_v0  ;;  %v318_v3 = vld [vmem:[#allocation2 + $0x50] sm:$0xff]  ;;  %v317_v4 = vld [vmem:[#allocation2 + $0x48] sm:$0xff]  ;;  %v1281_v16 = vmov 0.0   ;;  %vm400_vm0 = vcmask 1043456  }
  0x35   : > { %s303_s14 = scalar_select %p302_p9, %s1346_s28, 1  ;;  %344 = vmatpush1.xpose.msra.mxu0 %v320_v1  ;;  %v316_v7 = vld [vmem:[#allocation2 + $0x40] sm:$0xff]  ;;  %v315_v8 = vld [vmem:[#allocation2 + $0x38] sm:$0xff]  ;;  %v314_v9 = vld [vmem:[#allocation2 + $0x30] sm:$0xff]  ;;  %1068 = vmatprep.subr.mxu1 %v1281_v16  ;;  %vm1282_vm1 = vmmov 0   ;;  %vm396_vm2 = vcmask 31744  }
  0x36   : > { %345 = vmatprep.subr.mxu0 %v319_v2  ;;  %v313_v10 = vld [vmem:[#allocation2 + $0x28] sm:$0xff]  ;;  %v312_v11 = vld [vmem:[#allocation2 + $0x20] sm:$0xff]  ;;  %v311_v12 = vld [vmem:[#allocation2 + $0x18] sm:$0xff]  ;;  %1070 = vmatprep.mubr.msk.f32.mxu1 %vm1282_vm1, %v1281_v16  ;;  %vm756_vm3 = vcmask 1041408   ;;  %v1283_v39 = vmov 0   ;;  %vm752_vm4 = vcmask 408576  }
  0x37   : > { %s1058_s15 = sshll.u32 %s303_s14, 3  ;;  %v310_v13 = vld [vmem:[#allocation2 + $0x10] sm:$0xff]  ;;  %v309_v14 = vld [vmem:[#allocation2 + $0x8] sm:$0xff]  ;;  %v308_v15 = vld [vmem:[#allocation2] sm:$0xff]  ;;  %1153 = vset.pattern.permute.xlu0 %v1283_v39  ;;  %s299_s29 = sand.u32 1, %s1267_s25  }
  0x38   : > { %s306_s17 = scalar_lea.vmem %s1498_s0, %s1058_s15  ;;  %v395_v17 = vld [vmem:[%s1501_s3] sm:$0xff]  ;;  %v1032_v20 = vld [vmem:[%s1501_s3 + $0x8] sm:$0xff]  ;;  %v1037_v21 = vld [vmem:[%s1501_s3 + $0x10] sm:$0xff]  ;;  %s1026_s8 = sshll.u32 %s299_s29, 4 }
  0x39   : > { %v307_v5 = vld [vmem:[%s306_s17] sm:$0xff]  ;;  %346 = vmatpush1.xpose.msra.mxu0 %v318_v3  ;;  %v1042_v22 = vld [vmem:[%s1501_s3 + $0x18] sm:$0xff]  ;;  %v750_v24 = vld [vmem:[#allocation5 + $0x60] sm:$0x3]  ;;  %s1059_s9 = sshll.u32 %s1346_s28, 8  ;;  %s301_s14 = scalar_lea.vmem [#allocation7], %s1026_s8 }
  0x3a   : > { %v323_v6 = vcombine.high %v307_v5, %v307_v5  ;;  %347 = vmatprep.subr.mxu0 %v317_v4  ;;  %v751_v23 = vld [vmem:[#allocation5 + $0x68] sm:$0x3]  ;;  %v749_v25 = vld [vmem:[#allocation5 + $0x58] sm:$0xff]  ;;  %v748_v26 = vld [vmem:[#allocation5 + $0x50] sm:$0xff]  ;;  %s937_s15 = sshll.u32 %s301_s14, 4  ;;  %s935_s17 = scalar_lea.hbm %s1505_s7, %s1059_s9  ;;  %s938_s15 = int_to_ptr.vmem [resolvable:$true] %s937_s15 }
  0x3b   : > { %v747_v27 = vld [vmem:[#allocation5 + $0x48] sm:$0xff]  ;;  %v746_v28 = vld [vmem:[#allocation5 + $0x40] sm:$0xff]  ;;  %v745_v29 = vld [vmem:[#allocation5 + $0x38] sm:$0xff]  ;;  %s923_s18 = scalar_lea.sflag [#allocation4], %s299_s29  ;;  %s1207_s19 = scalar_lea.vmem %s938_s15, 256 }
  0x3c   : > { %389 = vmatprep.mubr.f32.mxu0 %v323_v6  ;;  %v744_v30 = vld [vmem:[#allocation5 + $0x30] sm:$0xff]  ;;  %v743_v31 = vld [vmem:[#allocation5 + $0x28] sm:$0xff]  ;;  %v742_v32 = vld [vmem:[#allocation5 + $0x20] sm:$0xff]  ;;  %p1208_p10 = scmp.ne.s32.totalorder %s938_s15, %s1207_s19  ;;  %s1284_s20 = smov [#allocation7]  }
  0x3d   : > { %348 = vmatpush1.xpose.msra.mxu0 %v316_v7  ;;  %v741_v33 = vld [vmem:[#allocation5 + $0x18] sm:$0xff]  ;;  %v740_v34 = vld [vmem:[#allocation5 + $0x10] sm:$0xff]  ;;  %v739_v35 = vld [vmem:[#allocation5 + $0x8] sm:$0xff]  ;;  %s1211_s28 = sshll.u32 %s1284_s20, 4  ;;  %s1212_s28 = int_to_ptr.vmem [resolvable:$false] %s1211_s28 }
  0x3e   : > { %349 = vmatprep.subr.mxu0 %v315_v8  ;;  %v738_v36 = vld [vmem:[#allocation5] sm:$0xff]  ;;  %v737_v37 = vld [vmem:[%s1503_s5] sm:$0xff]  ;;  %p1209_p12 = pnand %p1208_p10, %p1363_p5  ;;  %s1213_s21 = scalar_lea.vmem %s1212_s28, 512 }
  0x3f   : > { %v912_v38 = vld [vmem:[%s1504_s6] sm:$0xff]  ;;  %p1214_p11 = scmp.lt.s32.totalorder %s938_s15, %s1212_s28  ;;  %p1215_p0 = scmp.lt.s32.totalorder %s1213_s21, %s1207_s19 }
  0x40   : > { %915 = vperm.xlu0 %1153, %v912_v38   ;;  %v1036_v43 = vld [vmem:[%s1502_s4 + $0x1] ss:$0 sm:$0xff]  ;;  %v1031_v44 = vld [vmem:[%s1502_s4] ss:$0 sm:$0xff]  ;;  %v1041_v46 = vld [vmem:[%s1502_s4 + $0x2] ss:$0 sm:$0xff]  ;;  %p1210_p8 = pneg %p1209_p12 }
  0x41   : > { %350 = vmatpush1.xpose.msra.mxu0 %v314_v9  ;;  %v1046_v52 = vld [vmem:[%s1502_s4 + $0x3] ss:$0 sm:$0xff]  ;;  %p1216_p1 = por %p1215_p0, %p1214_p11 }
  0x42   : > { %351 = vmatprep.subr.mxu0 %v313_v10 }
  0x43   : > { %p1217_p3 = pnand %p1216_p1, %p1210_p8 }
  0x45   : > { %352 = vmatpush1.xpose.msra.mxu0 %v312_v11 }
  0x46   : > { %353 = vmatprep.subr.mxu0 %v311_v12 }
  0x49   : > { %354 = vmatpush1.xpose.msra.mxu0 %v310_v13 }
  0x4a   : > { %355 = vmatprep.subr.mxu0 %v309_v14 }
  0x4d   : > { %356 = vmatpush1.xpose.msra.mxu0 %v308_v15 }
  0x4e   : > { %1050 = vmatprep.subr.msk.mxu0 %vm400_vm0, %v323_v6 }
  0x50   : > { %390 = vmatmul.mubr.f32.vlgmr.msra.gmra.mxu0 %v307_v5 }
  0x51   : > { %905 = vmatprep.mubr.f32.mxu0 %v1281_v16  ;;  %1051 = vmatpush1.msk.msra.mxu0 %vm400_vm0, %v307_v5 }
  0x54   : > { %1052 = vmatmul.mubr.msk.f32.vlgmr.msra.gmra.mxu0 %vm396_vm2, %v737_v37 }
  0xbb   : > { %v916_v61 = vpop.permute.xlu0 %915 }
 0x110   : > { %v391_v18 = vpop.f32.mrf.mxu0 }
 0x111   : > { %1069 = vmatpush3.msk.msra.mxu1 %vm400_vm0, %v391_v18 }
 0x112   : > { %v393_v19 = vpop.f32.mrf.mxu0  ;;  %1071 = vmatmul.mubr.msk.f32.vlgmr.msra.gmra.mxu1 %vm396_vm2, %v395_v17  ;;  %1073 = vmatprep.subr.mxu1 %v1281_v16 }
 0x113   : > { %1074 = vmatpush3.msk.msra.mxu1 %vm400_vm0, %v391_v18  ;;  %1075 = vmatprep.mubr.msk.f32.mxu1 %vm1282_vm1, %v1281_v16 }
 0x114   : > { %1078 = vmatprep.subr.mxu1 %v1281_v16  ;;  %v907_v59 = vpop.f32.mrf.mxu0 }
 0x116   : > { %1076 = vmatmul.mubr.msk.f32.vlgmr.msra.gmra.mxu1 %vm396_vm2, %v1032_v20  ;;  %v909_v63 = vpop.f32.mrf.mxu0 }
 0x117   : > { %1079 = vmatpush3.msk.msra.mxu1 %vm400_vm0, %v391_v18  ;;  %1080 = vmatprep.mubr.msk.f32.mxu1 %vm1282_vm1, %v1281_v16 }
 0x118   : > { %1083 = vmatprep.subr.mxu1 %v1281_v16 }
 0x11a   : > { %1081 = vmatmul.mubr.msk.f32.vlgmr.msra.gmra.mxu1 %vm396_vm2, %v1037_v21 }
 0x11b   : > { %1084 = vmatpush3.msk.msra.mxu1 %vm400_vm0, %v391_v18  ;;  %1085 = vmatprep.mubr.msk.f32.mxu1 %vm1282_vm1, %v1281_v16 }
 0x11c   : > { %1047 = vmatprep.subr.msk.mxu1 %vm756_vm3, %v751_v23 }
 0x11e   : > { %1086 = vmatmul.mubr.msk.f32.vlgmr.msra.gmra.mxu1 %vm396_vm2, %v1042_v22 }
 0x11f   : > { %827 = vmatprep.mubr.f32.mxu1 %v1281_v16  ;;  %1048 = vmatpush1.msk.msra.mxu1 %vm756_vm3, %v750_v24 }
 0x120   : > { %783 = vmatprep.subr.mxu1 %v749_v25 }
 0x121   : > { %784 = vmatpush1.msra.mxu1 %v748_v26 }
 0x122   : > { %785 = vmatprep.subr.mxu1 %v747_v27 }
 0x123   : > { %786 = vmatpush1.msra.mxu1 %v746_v28 }
 0x124   : > { %787 = vmatprep.subr.mxu1 %v745_v29 }
 0x125   : > { %788 = vmatpush1.msra.mxu1 %v744_v30 }
 0x126   : > { %789 = vmatprep.subr.mxu1 %v743_v31 }
 0x127   : > { %790 = vmatpush1.msra.mxu1 %v742_v32 }
 0x128   : > { %791 = vmatprep.subr.mxu1 %v741_v33 }
 0x129   : > { %792 = vmatpush1.msra.mxu1 %v740_v34 }
 0x12a   : > { %793 = vmatprep.subr.mxu1 %v739_v35 }
 0x12b   : > { %794 = vmatpush1.msra.mxu1 %v738_v36 }
 0x1d2   : > { %v470_v40 = vpop.f32.mrf.mxu1 }
 0x1d3   : > { %v481_v49 = vmul.f32 %v1031_v44, %v470_v40 }
 0x1d4   : > { %v1072_v41 = vpop.f32.mrf.mxu1 }
 0x1d6   : > { %v553_v42 = vpop.f32.mrf.mxu1 }
 0x1d7   : > { %v565_v47 = vmul.f32 %v1036_v43, %v553_v42 }
 0x1d8   : > { %v1077_v45 = vpop.f32.mrf.mxu1 }
 0x1d9   : > { %v566_v53 = vadd.f32 %v565_v47, %v481_v49 }
 0x1da   : > { %v638_v48 = vpop.f32.mrf.mxu1 }
 0x1db   : > { %v650_v50 = vmul.f32 %v1041_v46, %v638_v48 }
 0x1dc   : > { %v1082_v51 = vpop.f32.mrf.mxu1 }
 0x1dd   : > { %v651_v55 = vadd.f32 %v650_v50, %v566_v53 }
 0x1de   : > { %v723_v54 = vpop.f32.mrf.mxu1 }
 0x1df   : > { %v735_v56 = vmul.f32 %v1046_v52, %v723_v54 }
 0x1e0   : > { %v1087_v57 = vpop.f32.mrf.mxu1 }
 0x1e1   : > { %v736_v58 = vadd.f32 %v735_v56, %v651_v55 }
 0x1e3   : > { %1049 = vmatmul.mubr.msk.f32.vlgmr.msra.gmra.mxu1 %vm752_vm4, %v736_v58 }
 0x2a3   : > { %v829_v60 = vpop.f32.mrf.mxu1 }
 0x2a4   : > { %v908_v62 = vadd.f32 %v907_v59, %v829_v60 }
 0x2a5   : > { %v831_v0 = vpop.f32.mrf.mxu1 }
 0x2a6   : > { %v918_v1 = vadd.f32 %v916_v61, %v908_v62  ;;  %v910_v2 = vadd.f32 %v909_v63, %v831_v0 }
 0x2a8   : > { %920 = vst [vmem:[%s301_s14] sm:$0xff] %v918_v1  ;;  %v919_v3 = vadd.f32 %v916_v61, %v910_v2 }
 0x2aa   : > { %921 = vst [vmem:[%s301_s14 + $0x8] sm:$0xff] %v919_v3 }
 0x2ab   : > { %1220 = shalt.err (!%p1217_p3)
}
 0x2ac   : > { %s1221_s22 = scalar_lea.hbm %s935_s17, 256  ;;  %s1225_s8 = scalar_lea.hbm %s1505_s7, 512 }
 0x2ad   : > { %p1222_p2 = scmp.ne.s32.totalorder %s935_s17, %s1221_s22  ;;  %p1226_p7 = scmp.lt.s32.totalorder %s935_s17, %s1505_s7 }
 0x2ae   : > { %p1227_p6 = scmp.lt.s32.totalorder %s1225_s8, %s1221_s22 }
 0x2af   : > { %p1223_p4 = pnand %p1222_p2, %p1363_p5 }
 0x2b0   : > { %p1228_p9 = por %p1227_p6, %p1226_p7 }
 0x2b1   : > { %p1224_p13 = pneg %p1223_p4 }
 0x2b3   : > { %p1229_p10 = pnand %p1228_p9, %p1224_p13 }
 0x2b5   : > { %1232 = shalt.err (!%p1229_p10)
}
 0x2b6   : > { %1096 = dma.vmem_to_hbm [thread:$0]  (%p1363_p5), %s938_s15, 256, %s935_s17, %s923_s18  }
 0x2b7 PF: > { %p1113_p12 = scmp.ge.s32.totalorder %s1275_s27, 2  ;;  %s949_s13 = sand.u32 1, %s1263_s24  }
 0x2b8   : > { %p1515_p8 = scmp.ne.s32.totalorder %s1508_s12, 0  ;;  %s950_s16 = scalar_lea.sflag [#allocation4], %s949_s13 }
 0x2ba   : > { %p1106_p11 = pnand %p1113_p12, %p1515_p8 }
 0x2bc   : > { %p1107_p0 = pneg %p1106_p11 }
 0x2be   : > { %1258 = dma.done.wait (%p1107_p0), %s950_s16, 256  }
 0x2bf   : > { %1260 = vsyncadd (%p1107_p0), %s950_s16, 4294967040  ;;  %p19_p1 = scmp.ge.s32.totalorder %s1350_s30, 4   ;;  %s1516_s24 = smov %s1267_s25 }
 0x2c0   : > { %s1517_s25 = smov %s1271_s26  ;;  %s1518_s26 = smov %s1361_s10 }
 0x2c1   : > { %s1519_s27 = smov %s1350_s30  ;;  %21 = sbr.rel (!%p19_p1) target bundleno = 5 (0x5), region = 98 }
 0x2c6   :  { %955 = vsyncpa [#allocation3], 1 }
 0x2c7   :  { %957 = vsyncpa [#allocation3 + $0x1], 1 }
 0x2c8   :  { %958 = vsyncpa [#allocation6], 1 }
 0x2c9   :  { %959 = vsyncpa [#allocation4], 1 }
 0x2ca   :  { %961 = vsyncpa [#allocation4 + $0x1], 1 }

</bundles_post_ra>
